<compile_context>
chip_gen: v7x
topology: tpu7x:2x2x1
jax: 0.10.0
libtpu: 0.0.40
codegen_flags: <defaults>
</compile_context>

<pallas_src>
import functools

import jax
import jax.numpy as jnp
from jax.experimental import pallas as pl
from jax.experimental.pallas import tpu as pltpu


def _shortcut_kernel(x_ref, s_ref, o_ref, *, nt, c_in, c_out, pad):
    """One batch tile (nt batch elements) per grid step.

    x_ref: (nt*C,     H*W)    flat input rows (lane-dense)
    s_ref: (H*W,      Ho*Wo)  0/1 stride-2 spatial selector (grid-invariant)
    o_ref: (nt*C_out, Ho*Wo)  flat zero-padded output rows (lane-dense)
    """
    # Stride-2 subsample of H and W as a single exact 0/1 MXU matmul with f32
    # accumulation (each output element is exactly one input value).
    sub = jnp.dot(x_ref[...], s_ref[...],
                  preferred_element_type=jnp.float32).astype(o_ref.dtype)

    # Channel zero-pad via slice stores (VMEM-only, no extra HBM traffic and
    # no MXU work): zero-fill the block once, then drop each batch element's
    # C live rows into place with static slice stores.
    o_ref[...] = jnp.zeros(o_ref.shape, o_ref.dtype)
    for b in range(nt):                      # nt is a compile-time constant
        dst = b * c_out + pad
        o_ref[dst:dst + c_in, :] = sub[b * c_in:(b + 1) * c_in, :]


def _chip_hint():
    """(two_tensorcores, physical_vmem_bytes); conservative if detection fails."""
    two_tc, vmem_phys = False, 64 * 1024 * 1024
    try:
        kind = jax.devices()[0].device_kind.lower()
        if "7" in kind:                                   # v7x: 2 TCs, 64 MiB/TC
            two_tc, vmem_phys = True, 64 * 1024 * 1024
        elif "v4" in kind or "v5" in kind or "v6" in kind:
            two_tc, vmem_phys = False, 128 * 1024 * 1024
    except Exception:
        pass
    return two_tc, vmem_phys


def _pick_batch_tile(N, C, C_out, HW, HoWo, itemsize, budget_bytes, prefer_split):
    """Largest batch tile nt (divisor of N) that fits the VMEM budget, subject
    to BlockSpec sublane legality (nt*C and nt*C_out multiples of 8, or the
    full-array block nt == N).  On two-TensorCore chips prefer >= 2 steps."""

    def footprint(nt):
        io = 2 * nt * (C * HW + C_out * HoWo) * itemsize       # dbl-buffered in+out blocks
        sel = 2 * HW * HoWo * itemsize                          # resident selector (dbl buf)
        interm = nt * C * HoWo * (4 + itemsize)                 # f32 matmul result + cast copy
        interm += nt * C_out * HoWo * itemsize                  # zero-fill / store temporaries
        return io + sel + interm

    def legal(nt):
        return nt == N or ((nt * C) % 8 == 0 and (nt * C_out) % 8 == 0)

    divisors = [d for d in range(1, N + 1) if N % d == 0 and legal(d)]
    fitting = [d for d in divisors if footprint(d) <= budget_bytes and d <= 256]
    if not fitting:
        fitting = [d for d in divisors if footprint(d) <= budget_bytes]
    if fitting:
        if prefer_split:
            multi = [d for d in fitting if N // d >= 2]
            if multi:
                return max(multi), footprint(max(multi))
        nt = max(fitting)
        return nt, footprint(nt)
    nt = min(divisors)                  # smallest legal tile; caller raises the limit
    return nt, footprint(nt)


def lambda_layer_shortcut(x, planes, *, vmem_budget_bytes=None):
    """Pallas equivalent of F.pad(x[:, :, ::2, ::2], (0,0,0,0,p//4,p//4))."""
    N, C, H, W = x.shape
    pad = planes // 4
    C_out = C + 2 * pad
    Ho, Wo = (H + 1) // 2, (W + 1) // 2      # matches x[:, :, ::2, ::2] for odd H/W too
    HW, HoWo = H * W, Ho * Wo
    dtype = x.dtype
    itemsize = jnp.dtype(dtype).itemsize

    two_tc, vmem_phys = _chip_hint()
    if vmem_budget_bytes is None:
        # ~48 MiB of blocks on v5e/v6e (128 MiB VMEM), ~25 MiB on v7x (64 MiB).
        vmem_budget_bytes = min(48 * 1024 * 1024, (vmem_phys * 2) // 5)

    nt, fp = _pick_batch_tile(N, C, C_out, HW, HoWo, itemsize,
                              vmem_budget_bytes, prefer_split=two_tc)
    grid = (N // nt,)
    vmem_limit = int(min(max(fp + 16 * 1024 * 1024, 32 * 1024 * 1024),
                         vmem_phys - 8 * 1024 * 1024))

    # Exact 0/1 spatial selector: S[h*W + w, p*Wo + q] = (h == 2p) & (w == 2q).
    eh = jnp.arange(H)[:, None] == 2 * jnp.arange(Ho)[None, :]            # (H, Ho)
    ew = jnp.arange(W)[:, None] == 2 * jnp.arange(Wo)[None, :]            # (W, Wo)
    sel = (eh[:, None, :, None] & ew[None, :, None, :]).reshape(HW, HoWo).astype(dtype)

    # Lane-dense flat views (contiguous reshapes, free in the wrapper).
    x2d = x.reshape(N * C, HW)

    kernel = functools.partial(_shortcut_kernel, nt=nt, c_in=C, c_out=C_out, pad=pad)

    out2d = pl.pallas_call(
        kernel,
        out_shape=jax.ShapeDtypeStruct((N * C_out, HoWo), dtype),
        grid=grid,
        in_specs=[
            pl.BlockSpec((nt * C, HW), lambda n: (n, 0)),
            pl.BlockSpec((HW, HoWo), lambda n: (0, 0)),    # grid-invariant: DMA'd once
        ],
        out_specs=pl.BlockSpec((nt * C_out, HoWo), lambda n: (n, 0)),
        compiler_params=pltpu.CompilerParams(
            dimension_semantics=("parallel",),
            vmem_limit_bytes=vmem_limit,
        ),
    )(x2d, sel)

    return out2d.reshape(N, C_out, Ho, Wo)


def _reference(x, planes):
    pad = planes // 4
    sub = x[:, :, ::2, ::2]
    return jnp.pad(sub, ((0, 0), (pad, pad), (0, 0), (0, 0)))


if __name__ == "__main__":
    key = jax.random.PRNGKey(0)
    N, C, H, W = 2, 4, 16, 16
    planes = 2 * C                      # typical option-A shortcut: doubles channels
    x = jax.random.normal(key, (N, C, H, W), dtype=jnp.float32)

    out = jax.block_until_ready(lambda_layer_shortcut(x, planes))

    ref = _reference(x, planes)
    assert out.shape == ref.shape, (out.shape, ref.shape)
    assert jnp.allclose(out, ref, atol=1e-6, rtol=1e-6)

    print("KERNEL_OK")
</pallas_src>

<mosaic_0001>
module attributes {stable_mosaic.version = 11 : i64} {
  func.func @_shortcut_kernel(%arg0: i32, %arg1: memref<8x256xf32, #tpu.memory_space<vmem>>, %arg2: memref<256x64xf32, #tpu.memory_space<vmem>>, %arg3: memref<16x64xf32, #tpu.memory_space<vmem>>) attributes {dimension_semantics = [#tpu.dimension_semantics<parallel>], iteration_bounds = array<i64: 1>, scalar_prefetch = 0 : i64, scratch_operands = 0 : i64, tpu.core_type = #tpu.core_type<tc>, window_params = [{transform_indices = @transform_0, window_bounds = array<i64: 8, 256>}, {pipeline_mode = #tpu.pipeline_mode<synchronous>, transform_indices = @transform_1, window_bounds = array<i64: 256, 64>}, {transform_indices = @transform_2, window_bounds = array<i64: 16, 64>}]} {
    %c0 = arith.constant 0 : index
    %c0_0 = arith.constant 0 : index
    %0 = vector.load %arg1[%c0, %c0_0] : memref<8x256xf32, #tpu.memory_space<vmem>>, vector<8x256xf32>
    %c0_1 = arith.constant 0 : index
    %c0_2 = arith.constant 0 : index
    %1 = vector.load %arg2[%c0_1, %c0_2] : memref<256x64xf32, #tpu.memory_space<vmem>>, vector<256x64xf32>
    %cst = arith.constant dense<0.000000e+00> : vector<8x64xf32>
    %2 = tpu.matmul %0, %1, %cst {dimension_numbers = #tpu.dot_dimension_numbers<[1], [0], [0], [1], [0, 0, 1, 1], [], []>} : vector<8x256xf32>, vector<256x64xf32>, vector<8x64xf32> -> vector<8x64xf32>
    %cst_3 = arith.constant 0.000000e+00 : f32
    %3 = vector.broadcast %cst_3 : f32 to vector<16x64xf32>
    %c0_4 = arith.constant 0 : index
    %c0_5 = arith.constant 0 : index
    %4 = vector.load %arg3[%c0_4, %c0_5] : memref<16x64xf32, #tpu.memory_space<vmem>>, vector<16x64xf32>
    tpu.vector_store %arg3[%c0_4, %c0_5], %3 {strides = array<i32>} : memref<16x64xf32, #tpu.memory_space<vmem>>, vector<16x64xf32>,
    %5 = vector.extract_strided_slice %2 {offsets = [0, 0], sizes = [4, 64], strides = [1, 1]} : vector<8x64xf32> to vector<4x64xf32>
    %c2 = arith.constant 2 : index
    %c0_6 = arith.constant 0 : index
    %6 = vector.load %arg3[%c2, %c0_6] : memref<16x64xf32, #tpu.memory_space<vmem>>, vector<4x64xf32>
    tpu.vector_store %arg3[%c2, %c0_6], %5 {strides = array<i32>} : memref<16x64xf32, #tpu.memory_space<vmem>>, vector<4x64xf32>,
    %7 = vector.extract_strided_slice %2 {offsets = [4, 0], sizes = [4, 64], strides = [1, 1]} : vector<8x64xf32> to vector<4x64xf32>
    %c10 = arith.constant 10 : index
    %c0_7 = arith.constant 0 : index
    %8 = vector.load %arg3[%c10, %c0_7] : memref<16x64xf32, #tpu.memory_space<vmem>>, vector<4x64xf32>
    tpu.vector_store %arg3[%c10, %c0_7], %7 {strides = array<i32>} : memref<16x64xf32, #tpu.memory_space<vmem>>, vector<4x64xf32>,
    return
  }
  func.func @transform_0(%arg0: i32) -> (i32, i32) {
    %c0_i32 = arith.constant 0 : i32
    %c0_i32_0 = arith.constant 0 : i32
    return %arg0, %c0_i32 : i32, i32
  }
  func.func @transform_1(%arg0: i32) -> (i32, i32) {
    %c0_i32 = arith.constant 0 : i32
    %c0_i32_0 = arith.constant 0 : i32
    %c0_i32_1 = arith.constant 0 : i32
    return %c0_i32, %c0_i32_0 : i32, i32
  }
  func.func @transform_2(%arg0: i32) -> (i32, i32) {
    %c0_i32 = arith.constant 0 : i32
    %c0_i32_0 = arith.constant 0 : i32
    return %arg0, %c0_i32 : i32, i32
  }
}

</mosaic_0001>

<bundles_post_ra>
// kernel: tpu_custom_call.1
= control target key start
LH: loop header
LB: loop body
LE: loop exit
PB: predicated region body
PF: predicated region fallthrough
CT: control target
= control target key end

     0   :  { %s367_s0 = inlined_call_operand.vmem [shape: f32[8,256], index: 0, kind: input, shape index: {}]   ;;  %s368_s1 = inlined_call_operand.vmem [shape: f32[256,64], index: 1, kind: input, shape index: {}]   ;;  %s369_s2 = inlined_call_operand.hbm [shape: f32[16,64], index: 2, kind: output, shape index: {}]  }
   0x1   :  { %v30_v0 = vld [vmem:[%s368_s1 + $0x80] sm:$0xff]  ;;  %v31_v1 = vld [vmem:[%s368_s1 + $0x88] sm:$0xff]  ;;  %v32_v5 = vld [vmem:[%s368_s1 + $0x90] sm:$0xff] }
   0x2   :  { %v14_v2 = vld [vmem:[%s368_s1] sm:$0xff]  ;;  %v174_v3 = vpack.c.bf16 %v31_v1, %v30_v0  ;;  %v15_v4 = vld [vmem:[%s368_s1 + $0x8] sm:$0xff]  ;;  %v33_v6 = vld [vmem:[%s368_s1 + $0x98] sm:$0xff] }
   0x3   :  { %v176_v7 = vpack.c.bf16 %v15_v4, %v14_v2  ;;  %v178_v8 = vpack.c.bf16 %v33_v6, %v32_v5  ;;  %v16_v9 = vld [vmem:[%s368_s1 + $0x10] sm:$0xff]  ;;  %v17_v10 = vld [vmem:[%s368_s1 + $0x18] sm:$0xff]  ;;  %v34_v11 = vld [vmem:[%s368_s1 + $0xa0] sm:$0xff] }
   0x4   :  { %175 = vmatprep.subr.bf16.mxu0 %v174_v3  ;;  %v35_v12 = vld [vmem:[%s368_s1 + $0xa8] sm:$0xff]  ;;  %v180_v13 = vpack.c.bf16 %v17_v10, %v16_v9  ;;  %v18_v15 = vld [vmem:[%s368_s1 + $0x20] sm:$0xff]  ;;  %v36_v17 = vld [vmem:[%s368_s1 + $0xb0] sm:$0xff] }
   0x5   :  { %177 = vmatpush3.bf16.msra.mxu0 %v176_v7  ;;  %v182_v14 = vpack.c.bf16 %v35_v12, %v34_v11  ;;  %v19_v16 = vld [vmem:[%s368_s1 + $0x28] sm:$0xff]  ;;  %v37_v18 = vld [vmem:[%s368_s1 + $0xb8] sm:$0xff]  ;;  %v20_v21 = vld [vmem:[%s368_s1 + $0x30] sm:$0xff] }
   0x6   :  { %179 = vmatprep.subr.bf16.mxu0 %v178_v8  ;;  %v184_v19 = vpack.c.bf16 %v19_v16, %v18_v15  ;;  %v186_v20 = vpack.c.bf16 %v37_v18, %v36_v17  ;;  %v21_v22 = vld [vmem:[%s368_s1 + $0x38] sm:$0xff]  ;;  %v38_v23 = vld [vmem:[%s368_s1 + $0xc0] sm:$0xff]  ;;  %v39_v24 = vld [vmem:[%s368_s1 + $0xc8] sm:$0xff] }
   0x7   :  { %v13_v25 = vld [vmem:[%s367_s0 + $0x8] sm:$0xff] }
   0x8   :  { %110 = vmatprep.mubr.f32.mxu0 %v13_v25 }
   0x9   :  { %181 = vmatpush3.bf16.msra.mxu0 %v180_v13 }
   0xa   :  { %183 = vmatprep.subr.bf16.mxu0 %v182_v14 }
   0xb   :  { %7 = vsyncpa [#allocation3], 0  ;;  %v188_v26 = vpack.c.bf16 %v21_v22, %v20_v21  ;;  %v190_v27 = vpack.c.bf16 %v39_v24, %v38_v23  ;;  %v22_v28 = vld [vmem:[%s368_s1 + $0x40] sm:$0xff]  ;;  %v23_v29 = vld [vmem:[%s368_s1 + $0x48] sm:$0xff]  ;;  %vm116_vm0 = vcmask 523264   ;;  %v234_v50 = vmov 0.0  }
   0xc   :  { %v40_v30 = vld [vmem:[%s368_s1 + $0xd0] sm:$0xff]  ;;  %v41_v31 = vld [vmem:[%s368_s1 + $0xd8] sm:$0xff]  ;;  %v192_v32 = vpack.c.bf16 %v23_v29, %v22_v28  ;;  %v42_v36 = vld [vmem:[%s368_s1 + $0xe0] sm:$0xff]  ;;  %117 = vst.msk [vmem:[#allocation2] sm:$0xff] %vm116_vm0, %v234_v50  ;;  %s235_s21 = smov [#allocation2]   ;;  %vm119_vm1 = vcmask 519168  }
   0xd   :  { %185 = vmatpush3.bf16.msra.mxu0 %v184_v19  ;;  %v194_v33 = vpack.c.bf16 %v41_v31, %v40_v30  ;;  %v24_v34 = vld [vmem:[%s368_s1 + $0x50] sm:$0xff]  ;;  %v25_v35 = vld [vmem:[%s368_s1 + $0x58] sm:$0xff]  ;;  %v43_v37 = vld [vmem:[%s368_s1 + $0xe8] sm:$0xff]  ;;  %118 = vst.msk [vmem:[#allocation2 + $0x8] sm:$0xff] %vm116_vm0, %v234_v50  ;;  %s128_s22 = sshll.u32 %s235_s21, 4  ;;  %vm121_vm2 = vcmask 523268   ;;  %s129_s22 = int_to_ptr.vmem [resolvable:$true] %s128_s22 }
   0xe   :  { %187 = vmatprep.subr.bf16.mxu0 %v186_v20  ;;  %v196_v38 = vpack.c.bf16 %v25_v35, %v24_v34  ;;  %v198_v39 = vpack.c.bf16 %v43_v37, %v42_v36  ;;  %v26_v40 = vld [vmem:[%s368_s1 + $0x60] sm:$0xff]  ;;  %v27_v41 = vld [vmem:[%s368_s1 + $0x68] sm:$0xff]  ;;  %v44_v42 = vld [vmem:[%s368_s1 + $0xf0] sm:$0xff]  ;;  %p215_p1 = scmp.lt.s32.totalorder %s129_s22, %s129_s22 }
   0xf   :  { %v45_v43 = vld [vmem:[%s368_s1 + $0xf8] sm:$0xff]  ;;  %v200_v44 = vpack.c.bf16 %v27_v41, %v26_v40  ;;  %v28_v46 = vld [vmem:[%s368_s1 + $0x70] sm:$0xff]  ;;  %v12_v49 = vld [vmem:[%s367_s0] sm:$0xff] }
  0x10   :  { %v202_v45 = vpack.c.bf16 %v45_v43, %v44_v42  ;;  %v29_v47 = vld [vmem:[%s368_s1 + $0x78] sm:$0xff]  ;;  %s210_s1 = scalar_lea.vmem %s129_s22, 256 }
  0x11   :  { %189 = vmatpush3.bf16.msra.mxu0 %v188_v26  ;;  %v204_v48 = vpack.c.bf16 %v29_v47, %v28_v46  ;;  %p211_p0 = scmp.ne.s32.totalorder %s129_s22, %s210_s1  ;;  %p216_p2 = scmp.lt.s32.totalorder %s210_s1, %s210_s1 }
  0x12   :  { %191 = vmatprep.subr.bf16.mxu0 %v190_v27 }
  0x13   :  { %p217_p3 = por %p216_p2, %p215_p1 }
  0x15   :  { %193 = vmatpush3.bf16.msra.mxu0 %v192_v32  ;;  %p218_p4 = pnand %p217_p3, %p211_p0 }
  0x16   :  { %195 = vmatprep.subr.bf16.mxu0 %v194_v33 }
  0x19   :  { %197 = vmatpush3.bf16.msra.mxu0 %v196_v38 }
  0x1a   :  { %199 = vmatprep.subr.bf16.mxu0 %v198_v39 }
  0x1d   :  { %201 = vmatpush3.bf16.msra.mxu0 %v200_v44 }
  0x1e   :  { %203 = vmatprep.subr.bf16.mxu0 %v202_v45 }
  0x21   :  { %205 = vmatpush3.bf16.msra.mxu0 %v204_v48 }
  0x24   :  { %111 = vmatmul.mubr.f32.vlgmr.msra.gmra.mrb[0].mxu0 %v12_v49 }
  0xf7   :  { %v171_v51 = vpop.f32.mrb[0].mxu0 }
  0xf8   :  { %v172_v52 = vpop.f32.mrb[1].mxu0 }
  0xf9   :  { %v173_v53 = vadd.f32 %v172_v52, %v171_v51 }
  0xfb   :  { %120 = vst.msk [vmem:[#allocation2 + $0x2] sm:$0xf] %vm119_vm1, %v173_v53 }
  0xfc   :  { %122 = vst.msk [vmem:[#allocation2 + $0x6] sm:$0xf0] %vm121_vm2, %v173_v53 }
  0xfd   :  { %221 = shalt.err (!%p218_p4)
}
  0xfe   :  { %s222_s24 = scalar_lea.hbm %s369_s2, 256 }
  0xff   :  { %p223_p5 = scmp.ne.s32.totalorder %s369_s2, %s222_s24  ;;  %p226_p6 = scmp.lt.u32.totalorder %s222_s24, %s369_s2 }
 0x101   :  { %p228_p7 = pnand %p226_p6, %p223_p5 }
 0x103   :  { %231 = shalt.err (!%p228_p7)
}
 0x104   :  { %s236_s29 = smov 128   ;;  %s237_s30 = smov 8  }
 0x105   :  { %134 = dma.vmem_to_hbm [thread:$0]  %s129_s22, 256, %s369_s2, [#allocation3], %s236_s29, %s236_s29, %s237_s30  }
 0x106   :  { %232 = dma.done.wait [#allocation3], 256  }
 0x107   :  { %233 = vsyncadd [#allocation3], 4294967040 }
 0x108   :  { %138 = vsyncpa [#allocation3], 1 }

</bundles_post_ra>
